<compile_context>
chip_gen: v7x
topology: tpu7x:2x2x1
jax: 0.10.0
libtpu: 0.0.40
codegen_flags: <defaults>
</compile_context>

<pallas_src>
import math

import jax
import jax.numpy as jnp
from jax.experimental import pallas as pl
from jax.experimental.pallas import tpu as pltpu


def _hyperprior_kernel(step_ref, x_ref, g_ref, wrow_ref, b_ref, init_ref, sw_ref, o_ref):
    # step_ref: scalar-prefetch SMEM ref [1] i32
    # x_ref:    VMEM [B, N, Z]      g_ref: VMEM [N, Z]
    # wrow_ref: VMEM [1, 2, Z]  (only the selected fc_w row, split into its Z-halves)
    # b_ref / init_ref: SMEM [U]    sw_ref: SMEM [1]     o_ref: SMEM [1]
    step = step_ref[0]

    x = x_ref[...]                                              # [B, N, Z]
    B, N, Z = x.shape
    # mean(0).mean(0) == mean over the merged (B*N) axis; valid only because all
    # B groups have identical size N (equal weights).
    inv_bn = 1.0 / float(B * N)
    mean_x = jnp.sum(jnp.sum(x, axis=0), axis=0, keepdims=True) * inv_bn   # [1, Z]
    mean_g = jnp.mean(g_ref[...], axis=0, keepdims=True)                   # [1, Z]

    w = wrow_ref[...]                                           # [1, 2, Z]
    # F.linear restricted to the selected output unit:
    #   dot(concat(mean_x, mean_g), fc_w[step]) + fc_b[step]
    # as two VPU elementwise multiplies + a lane reduction (no MXU, no concat).
    net_s = jnp.sum(mean_x * w[:, 0, :] + mean_g * w[:, 1, :]) + b_ref[step]

    o_ref[0] = init_ref[step] + sw_ref[0] * net_s


def hyperprior_combination(input_x, grad0, step_idx, fc_w, fc_b, init_vars, softweight):
    """input_x: [B, N, Z] f32; grad0: [N, Z] f32; step_idx: [1] i32.
    fc_w: [U, 2Z] f32; fc_b: [U]-like f32; init_vars: [U]-like f32;
    softweight: scalar (python float or f32 array). Returns shape [1] f32."""
    B, N, Z = input_x.shape
    U, two_z = fc_w.shape
    assert two_z == 2 * Z

    # Present fc_w as [U, 2, Z] so the kernel slices the Z-halves along sublanes.
    fc_w3 = jnp.asarray(fc_w, jnp.float32).reshape(U, 2, Z)
    fc_b1 = jnp.asarray(fc_b, jnp.float32).reshape(U)
    init1 = jnp.asarray(init_vars, jnp.float32).reshape(U)
    sw = jnp.asarray(softweight, jnp.float32).reshape(1)
    # Clamp so the index_map-driven row DMA never goes out of range (PyTorch would
    # raise on an OOB index; here we clamp instead of reading arbitrary memory).
    step = jnp.clip(jnp.asarray(step_idx, jnp.int32).reshape(1), 0, U - 1)

    out = pl.pallas_call(
        _hyperprior_kernel,
        out_shape=jax.ShapeDtypeStruct((1,), jnp.float32),
        grid_spec=pltpu.PrefetchScalarGridSpec(
            num_scalar_prefetch=1,          # step -> SMEM, feeds fc_w's index_map
            grid=(1,),
            in_specs=[
                pl.BlockSpec((B, N, Z), lambda i, s: (0, 0, 0)),
                pl.BlockSpec((N, Z), lambda i, s: (0, 0)),
                # DMA only the selected fc_w row.
                pl.BlockSpec((1, 2, Z), lambda i, s: (s[0], 0, 0)),
                pl.BlockSpec(memory_space=pltpu.MemorySpace.SMEM),   # fc_b  [U]
                pl.BlockSpec(memory_space=pltpu.MemorySpace.SMEM),   # init  [U]
                pl.BlockSpec(memory_space=pltpu.MemorySpace.SMEM),   # softweight [1]
            ],
            out_specs=pl.BlockSpec(memory_space=pltpu.MemorySpace.SMEM),
        ),
    )(step, input_x, grad0, fc_w3, fc_b1, init1, sw)
    return out


def _reference(input_x, grad0, step_idx, fc_w, fc_b, init_vars, softweight):
    mean_x = input_x.mean(axis=0).mean(axis=0)
    mean_g = grad0.mean(axis=0)
    net = jnp.concatenate([mean_x, mean_g], axis=0)
    net = fc_w @ net + fc_b.reshape(-1)
    s = int(step_idx[0])
    return (init_vars.reshape(-1)[s] + softweight * net[s]).reshape(1)


if __name__ == "__main__":
    # Small shapes consistent with the module's forward:
    B, N = 2, 8                  # input_x: [B, N, z_dim]
    z_dim = 32
    update_step = 5
    softweight = 0.01            # args.hyperprior_combination_softweight

    key = jax.random.PRNGKey(0)
    kx, kg, kw = jax.random.split(key, 3)

    input_x = jax.random.normal(kx, (B, N, z_dim), dtype=jnp.float32)
    grad0 = jax.random.normal(kg, (N, z_dim), dtype=jnp.float32)
    step_idx = jnp.array([2], dtype=jnp.int32)

    # Deterministic parameter init (mirrors __init__ shapes):
    # fc_w ~ kaiming_normal on [update_step, 2*z_dim]: std = sqrt(2 / fan_in)
    fan_in = 2 * z_dim
    fc_w = jax.random.normal(kw, (update_step, 2 * z_dim), dtype=jnp.float32) * math.sqrt(2.0 / fan_in)
    fc_b = jnp.zeros((update_step,), dtype=jnp.float32)
    # hyperprior_init_mode == 'LP': [0, 0, ..., 0, 1]
    init_vars = jnp.zeros((update_step,), dtype=jnp.float32).at[update_step - 1].set(1.0)

    out = hyperprior_combination(input_x, grad0, step_idx, fc_w, fc_b, init_vars, softweight)
    out = jax.block_until_ready(out)

    ref = _reference(input_x, grad0, step_idx, fc_w, fc_b, init_vars, softweight)
    assert out.shape == (1,)
    assert jnp.allclose(out, ref, atol=1e-5, rtol=1e-5), (out, ref)

    print("KERNEL_OK")
</pallas_src>

<mosaic_0001>
module attributes {stable_mosaic.version = 11 : i64} {
  func.func @_hyperprior_kernel(%arg0: i32, %arg1: memref<1xi32, #tpu.memory_space<smem>>, %arg2: memref<2x8x32xf32, #tpu.memory_space<vmem>>, %arg3: memref<8x32xf32, #tpu.memory_space<vmem>>, %arg4: memref<1x2x32xf32, #tpu.memory_space<vmem>>, %arg5: memref<5xf32, #tpu.memory_space<smem>>, %arg6: memref<5xf32, #tpu.memory_space<smem>>, %arg7: memref<1xf32, #tpu.memory_space<smem>>, %arg8: memref<1xf32, #tpu.memory_space<smem>>) attributes {dimension_semantics = [#tpu.dimension_semantics<arbitrary>], iteration_bounds = array<i64: 1>, scalar_prefetch = 1 : i64, scratch_operands = 0 : i64, tpu.core_type = #tpu.core_type<tc>, window_params = [{pipeline_mode = #tpu.pipeline_mode<synchronous>, transform_indices = @transform_0, window_bounds = array<i64: 2, 8, 32>}, {pipeline_mode = #tpu.pipeline_mode<synchronous>, transform_indices = @transform_1, window_bounds = array<i64: 8, 32>}, {transform_indices = @transform_2, window_bounds = array<i64: 1, 2, 32>}, {transform_indices = @transform_3, window_bounds = array<i64: 5>}, {transform_indices = @transform_4, window_bounds = array<i64: 5>}, {transform_indices = @transform_5, window_bounds = array<i64: 1>}, {transform_indices = @transform_6, window_bounds = array<i64: 1>}]} {
    %c0 = arith.constant 0 : index
    %0 = memref.load %arg1[%c0] : memref<1xi32, #tpu.memory_space<smem>>
    %c0_0 = arith.constant 0 : index
    %c0_1 = arith.constant 0 : index
    %c0_2 = arith.constant 0 : index
    %1 = vector.load %arg2[%c0_0, %c0_1, %c0_2] : memref<2x8x32xf32, #tpu.memory_space<vmem>>, vector<2x8x32xf32>
    %cst = arith.constant dense<0.000000e+00> : vector<8x32xf32>
    %2 = vector.multi_reduction <add>, %1, %cst [0] : vector<2x8x32xf32> to vector<8x32xf32>
    %cst_3 = arith.constant dense<0.000000e+00> : vector<32xf32>
    %3 = vector.multi_reduction <add>, %2, %cst_3 [0] : vector<8x32xf32> to vector<32xf32>
    %4 = vector.shape_cast %3 : vector<32xf32> to vector<1x32xf32>
    %cst_4 = arith.constant 6.250000e-02 : f32
    %5 = vector.broadcast %cst_4 : f32 to vector<1x32xf32>
    %6 = arith.mulf %4, %5 : vector<1x32xf32>
    %c0_5 = arith.constant 0 : index
    %c0_6 = arith.constant 0 : index
    %7 = vector.load %arg3[%c0_5, %c0_6] : memref<8x32xf32, #tpu.memory_space<vmem>>, vector<8x32xf32>
    %cst_7 = arith.constant dense<0.000000e+00> : vector<32xf32>
    %8 = vector.multi_reduction <add>, %7, %cst_7 [0] : vector<8x32xf32> to vector<32xf32>
    %9 = vector.shape_cast %8 : vector<32xf32> to vector<1x32xf32>
    %cst_8 = arith.constant 8.000000e+00 : f32
    %10 = vector.broadcast %cst_8 : f32 to vector<1x32xf32>
    %11 = arith.divf %9, %10 : vector<1x32xf32>
    %c0_9 = arith.constant 0 : index
    %c0_10 = arith.constant 0 : index
    %c0_11 = arith.constant 0 : index
    %12 = vector.load %arg4[%c0_9, %c0_10, %c0_11] : memref<1x2x32xf32, #tpu.memory_space<vmem>>, vector<1x2x32xf32>
    %13 = vector.extract_strided_slice %12 {offsets = [0, 0, 0], sizes = [1, 1, 32], strides = [1, 1, 1]} : vector<1x2x32xf32> to vector<1x1x32xf32>
    %14 = vector.shape_cast %13 : vector<1x1x32xf32> to vector<1x32xf32>
    %15 = arith.mulf %6, %14 : vector<1x32xf32>
    %16 = vector.extract_strided_slice %12 {offsets = [0, 1, 0], sizes = [1, 1, 32], strides = [1, 1, 1]} : vector<1x2x32xf32> to vector<1x1x32xf32>
    %17 = vector.shape_cast %16 : vector<1x1x32xf32> to vector<1x32xf32>
    %18 = arith.mulf %11, %17 : vector<1x32xf32>
    %19 = arith.addf %15, %18 : vector<1x32xf32>
    %20 = vector.shape_cast %19 : vector<1x32xf32> to vector<1x1x32xf32>
    %cst_12 = arith.constant dense<0.000000e+00> : vector<1xf32>
    %21 = vector.multi_reduction <add>, %20, %cst_12 [1, 2] : vector<1x1x32xf32> to vector<1xf32>
    %22 = vector.shape_cast %21 : vector<1xf32> to vector<1x1x1xf32>
    %23 = vector.extract %22[0, 0, 0] : f32 from vector<1x1x1xf32>
    %24 = arith.index_cast %0 : i32 to index
    %25 = memref.load %arg5[%24] : memref<5xf32, #tpu.memory_space<smem>>
    %26 = arith.addf %23, %25 : f32
    %27 = arith.index_cast %0 : i32 to index
    %28 = memref.load %arg6[%27] : memref<5xf32, #tpu.memory_space<smem>>
    %c0_13 = arith.constant 0 : index
    %29 = memref.load %arg7[%c0_13] : memref<1xf32, #tpu.memory_space<smem>>
    %30 = arith.mulf %29, %26 : f32
    %31 = arith.addf %28, %30 : f32
    %c0_14 = arith.constant 0 : index
    %32 = memref.load %arg8[%c0_14] : memref<1xf32, #tpu.memory_space<smem>>
    memref.store %31, %arg8[%c0_14] : memref<1xf32, #tpu.memory_space<smem>>
    return
  }
  func.func @transform_0(%arg0: i32, %arg1: memref<1xi32, #tpu.memory_space<smem>>) -> (i32, i32, i32) {
    %c0_i32 = arith.constant 0 : i32
    %c0_i32_0 = arith.constant 0 : i32
    %c0_i32_1 = arith.constant 0 : i32
    %c0_i32_2 = arith.constant 0 : i32
    return %c0_i32, %c0_i32_0, %c0_i32_1 : i32, i32, i32
  }
  func.func @transform_1(%arg0: i32, %arg1: memref<1xi32, #tpu.memory_space<smem>>) -> (i32, i32) {
    %c0_i32 = arith.constant 0 : i32
    %c0_i32_0 = arith.constant 0 : i32
    %c0_i32_1 = arith.constant 0 : i32
    return %c0_i32, %c0_i32_0 : i32, i32
  }
  func.func @transform_2(%arg0: i32, %arg1: memref<1xi32, #tpu.memory_space<smem>>) -> (i32, i32, i32) {
    %c0 = arith.constant 0 : index
    %0 = memref.load %arg1[%c0] : memref<1xi32, #tpu.memory_space<smem>>
    %c0_i32 = arith.constant 0 : i32
    %c0_i32_0 = arith.constant 0 : i32
    %c0_i32_1 = arith.constant 0 : i32
    return %0, %c0_i32, %c0_i32_0 : i32, i32, i32
  }
  func.func @transform_3(%arg0: i32, %arg1: memref<1xi32, #tpu.memory_space<smem>>) -> i32 {
    %c0_i32 = arith.constant 0 : i32
    %c0_i32_0 = arith.constant 0 : i32
    return %c0_i32 : i32
  }
  func.func @transform_4(%arg0: i32, %arg1: memref<1xi32, #tpu.memory_space<smem>>) -> i32 {
    %c0_i32 = arith.constant 0 : i32
    %c0_i32_0 = arith.constant 0 : i32
    return %c0_i32 : i32
  }
  func.func @transform_5(%arg0: i32, %arg1: memref<1xi32, #tpu.memory_space<smem>>) -> i32 {
    %c0_i32 = arith.constant 0 : i32
    %c0_i32_0 = arith.constant 0 : i32
    return %c0_i32 : i32
  }
  func.func @transform_6(%arg0: i32, %arg1: memref<1xi32, #tpu.memory_space<smem>>) -> i32 {
    %c0_i32 = arith.constant 0 : i32
    %c0_i32_0 = arith.constant 0 : i32
    return %c0_i32 : i32
  }
}

</mosaic_0001>

<bundles_post_ra>
// kernel: tpu_custom_call.1
= control target key start
LH: loop header
LB: loop body
LE: loop exit
PB: predicated region body
PF: predicated region fallthrough
CT: control target
= control target key end

     0   :  { %14 = vsyncpa [#allocation6], 0  ;;  %s374_s0 = inlined_call_operand.<no memory space> [shape: s32[1], index: 0, kind: input, shape index: {}]   ;;  %s375_s1 = inlined_call_operand.hbm [shape: f32[2,8,32], index: 1, kind: input, shape index: {}]   ;;  %s376_s2 = inlined_call_operand.hbm [shape: f32[8,32], index: 2, kind: input, shape index: {}]   ;;  %s377_s3 = inlined_call_operand.vmem [shape: f32[5,2,32], index: 3, kind: input, shape index: {}]   ;;  %s378_s4 = inlined_call_operand.vmem [shape: f32[5], index: 4, kind: input, shape index: {}]   ;;  %s379_s5 = inlined_call_operand.vmem [shape: f32[5], index: 5, kind: input, shape index: {}]   ;;  %s380_s6 = inlined_call_operand.<no memory space> [shape: f32[1], index: 6, kind: input, shape index: {}]   ;;  %s381_s7 = inlined_call_operand.hbm [shape: f32[1], index: 7, kind: output, shape index: {}]  }
   0x1   :  { %15 = vsyncpa [#allocation10], 0 }
   0x2   :  { %16 = vsyncpa [#allocation8], 0 }
   0x3   :  { %17 = vsyncpa [#allocation13], 0 }
   0x4   :  { %18 = vsyncpa [#allocation7], 0  ;;  %s267_s24 = smov [#allocation5]   ;;  %s179_s28 = scalar_lea.hbm %s375_s1, 256 }
   0x5   :  { %s24_s25 = sshll.u32 %s267_s24, 4  ;;  %p180_p0 = scmp.ne.s32.totalorder %s375_s1, %s179_s28  ;;  %s25_s25 = int_to_ptr.vmem [resolvable:$true] %s24_s25 }
   0x6   :  { %p183_p1 = scmp.lt.u32.totalorder %s179_s28, %s375_s1 }
   0x8   :  { %p185_p2 = pnand %p183_p1, %p180_p0 }
   0xa   :  { %188 = shalt.err (!%p185_p2)
}
   0xb   :  { %s189_s10 = scalar_lea.vmem %s25_s25, 256  ;;  %p194_p4 = scmp.lt.s32.totalorder %s25_s25, %s25_s25 }
   0xc   :  { %p190_p3 = scmp.ne.s32.totalorder %s25_s25, %s189_s10  ;;  %p195_p5 = scmp.lt.s32.totalorder %s189_s10, %s189_s10 }
   0xe   :  { %p196_p6 = por %p195_p5, %p194_p4 }
  0x10   :  { %p197_p7 = pnand %p196_p6, %p190_p3 }
  0x12   :  { %200 = shalt.err (!%p197_p7)
}
  0x13   :  { %s268_s11 = smov 128   ;;  %s269_s12 = smov 8  }
  0x14   :  { %30 = dma.hbm_to_vmem [thread:$0]  %s375_s1, 256, %s25_s25, [#allocation6], %s268_s11, %s268_s11, %s269_s12  }
  0x15   :  { %s270_s15 = smov [#allocation9]   ;;  %s55_s19 = sshll.u32 %s378_s4, 4  ;;  %s56_s19 = int_to_ptr.vmem [resolvable:$true] %s55_s19 }
  0x16   :  { %s37_s16 = sshll.u32 %s270_s15, 4  ;;  %s201_s22 = scalar_lea.hbm %s376_s2, 128  ;;  %s38_s16 = int_to_ptr.vmem [resolvable:$true] %s37_s16 }
  0x17   :  { %p202_p8 = scmp.ne.s32.totalorder %s376_s2, %s201_s22  ;;  %p205_p9 = scmp.lt.u32.totalorder %s201_s22, %s376_s2 }
  0x19   :  { %p207_p10 = pnand %p205_p9, %p202_p8 }
  0x1b   :  { %210 = shalt.err (!%p207_p10)
}
  0x1c   :  { %s211_s1 = scalar_lea.vmem %s38_s16, 128  ;;  %p216_p12 = scmp.lt.s32.totalorder %s38_s16, %s38_s16 }
  0x1d   :  { %p212_p11 = scmp.ne.s32.totalorder %s38_s16, %s211_s1  ;;  %p217_p13 = scmp.lt.s32.totalorder %s211_s1, %s211_s1 }
  0x1f   :  { %p218_p0 = por %p217_p13, %p216_p12 }
  0x21   :  { %p219_p1 = pnand %p218_p0, %p212_p11 }
  0x23   :  { %222 = shalt.err (!%p219_p1)
}
  0x24   :  { %40 = dma.hbm_to_vmem [thread:$0]  %s376_s2, 128, %s38_s16, [#allocation10]  }
  0x25   :  { %s65_s30 = sshll.u32 %s379_s5, 4  ;;  %s223_s8 = scalar_lea.vmem %s56_s19, 16  ;;  %s66_s30 = int_to_ptr.vmem [resolvable:$true] %s65_s30 }
  0x26   :  { %p224_p2 = scmp.ne.s32.totalorder %s56_s19, %s223_s8  ;;  %p228_p3 = scmp.lt.s32.totalorder %s56_s19, %s56_s19 }
  0x27   :  { %p229_p4 = scmp.lt.s32.totalorder %s223_s8, %s223_s8 }
  0x29   :  { %p230_p5 = por %p229_p4, %p228_p3 }
  0x2b   :  { %p231_p6 = pnand %p230_p5, %p224_p2 }
  0x2d   :  { %234 = shalt.err (!%p231_p6)
}
  0x2e   :  { %s271_s9 = smov [#allocation11]   ;;  %s235_s10 = scalar_lea.vmem %s66_s30, 16 }
  0x2f   :  { %58 = dma.vmem_to_smem %s56_s19, 16, %s271_s9, [#allocation8]  }
  0x30   :  { %p236_p7 = scmp.ne.s32.totalorder %s66_s30, %s235_s10  ;;  %p240_p8 = scmp.lt.s32.totalorder %s66_s30, %s66_s30 }
  0x31   :  { %p241_p9 = scmp.lt.s32.totalorder %s235_s10, %s235_s10 }
  0x33   :  { %p242_p10 = por %p241_p9, %p240_p8 }
  0x35   :  { %p243_p11 = pnand %p242_p10, %p236_p7 }
  0x37   :  { %246 = shalt.err (!%p243_p11)
}
  0x38   :  { %s272_s2 = smov [#allocation12]  }
  0x39   :  { %68 = dma.vmem_to_smem %s66_s30, 16, %s272_s2, [#allocation13]  }
  0x3a   :  { %257 = dma.done.wait [#allocation6], 256  }
  0x3b   :  { %258 = vsyncadd [#allocation6], 4294967040 }
  0x3c   :  { %259 = dma.done.wait [#allocation10], 128  }
  0x3d   :  { %260 = vsyncadd [#allocation10], 4294967168 }
  0x3e   :  { %261 = dma.done.wait [#allocation8], 16  }
  0x3f   :  { %262 = vsyncadd [#allocation8], 4294967280 }
  0x40   :  { %263 = dma.done.wait [#allocation13], 16  }
  0x41   :  { %264 = vsyncadd [#allocation13], 4294967280 }
  0x42   :  { %83 = sfence }
  0x43   :  { %p90_p12 = scmp.lt.s32.totalorder %s374_s0, 4  ;;  %v96_v0 = vld [vmem:[#allocation5] sm:$0xff]  ;;  %v97_v1 = vld [vmem:[#allocation5 + $0x8] sm:$0xff]  ;;  %vm98_vm0 = vcmask 261120   ;;  %v110_v2 = vld [vmem:[#allocation9] sm:$0xff]  ;;  %vm127_vm1 = vcmask 253952  }
  0x44   :  { %v99_v3 = vsel %vm98_vm0, %v96_v0, 0.0  ;;  %v100_v4 = vsel %vm98_vm0, %v97_v1, 0.0  ;;  %v111_v5 = vsel %vm98_vm0, %v110_v2, 0.0  ;;  %s138_s20 = sld [smem:[#allocation11 + %s374_s0]]  ;;  %s247_s30 = scalar_lea.hbm %s381_s7, 16 }
  0x45   :  { %v101_v6 = vadd.f32 %v100_v4, %v99_v3  ;;  %v112_v7 = vrot.slane %v111_v5, 4  ;;  %s91_s14 = scalar_select %p90_p12, %s374_s0, 4 }
  0x46   :  { %s140_s23 = sld [smem:[#allocation12 + %s374_s0]]  ;;  %p248_p13 = scmp.ne.s32.totalorder %s381_s7, %s247_s30 }
  0x47   :  { %v102_v8 = vsel %vm98_vm0, %v101_v6, 0.0  ;;  %v113_v9 = vadd.f32 %v112_v7, %v111_v5  ;;  %s169_s15 = sshll.u32 %s91_s14, 1  ;;  %p251_p0 = scmp.lt.u32.totalorder %s247_s30, %s381_s7 }
  0x48   :  { %v103_v10 = vrot.slane %v102_v8, 4  ;;  %s93_s18 = scalar_lea.vmem %s377_s3, %s169_s15 }
  0x49   :  { %v114_v11 = vrot.slane %v113_v9, 2  ;;  %v120_v19 = vld [vmem:[%s93_s18] sm:$0x3]  ;;  %p253_p1 = pnand %p251_p0, %p248_p13 }
  0x4a   :  { %v104_v12 = vadd.f32 %v103_v10, %v102_v8 }
  0x4b   :  { %v115_v13 = vadd.f32 %v114_v11, %v113_v9 }
  0x4c   :  { %v105_v14 = vrot.slane %v104_v12, 2 }
  0x4d   :  { %v116_v15 = vrot.slane %v115_v13, 1 }
  0x4e   :  { %v106_v16 = vadd.f32 %v105_v14, %v104_v12 }
  0x4f   :  { %v117_v17 = vadd.f32 %v116_v15, %v115_v13 }
  0x50   :  { %v107_v18 = vrot.slane %v106_v16, 1 }
  0x51   :  { %v119_v20 = vmul.f32 0.125, %v117_v17 }
  0x52   :  { %v108_v21 = vadd.f32 %v107_v18, %v106_v16 }
  0x53   :  { %v122_v22 = vmul.f32 %v120_v19, %v119_v20 }
  0x54   :  { %v109_v23 = vmul.f32 0.0625, %v108_v21 }
  0x55   :  { %v124_v24 = vrot.slane %v122_v22, 1 }
  0x56   :  { %v121_v25 = vmul.f32 %v120_v19, %v109_v23 }
  0x58   :  { %v126_v26 = vadd.f32 %v124_v24, %v121_v25 }
  0x5a   :  { %v128_v27 = vsel %vm127_vm1, %v126_v26, 0.0 }
  0x5b   :  { %129 = vadd.xlane.f32.xlu0 %v128_v27 }
  0xe8   :  { %v130_v28 = vpop.xlane.xlu0 %129 }
  0xe9   :  { %v131_v29 = vrot.slane %v130_v28, 4 }
  0xeb   :  { %v132_v30 = vadd.f32 %v131_v29, %v130_v28 }
  0xed   :  { %v133_v31 = vrot.slane %v132_v30, 2 }
  0xef   :  { %v134_v32 = vadd.f32 %v133_v31, %v132_v30 }
  0xf1   :  { %v135_v33 = vrot.slane %v134_v32, 1 }
  0xf3   :  { %v136_v34 = vadd.f32 %v135_v33, %v134_v32 }
  0xf5   :  { %170 = vpush %v136_v34 }
 0x126   :  { %s171_s24 = spop %170 }
 0x127   :  { %s139_s26 = sadd.f32 %s171_s24, %s138_s20 }
 0x129   :  { %s142_s4 = smul.f32 %s139_s26, %s380_s6 }
 0x12b   :  { %s143_s25 = sadd.f32 %s142_s4, %s140_s23 }
 0x12d   :  { %145 = sst [smem:[#allocation14]] %s143_s25 }
 0x12e   :  { %256 = shalt.err (!%p253_p1)
}
 0x12f   :  { %s273_s0 = smov [#allocation14]  }
 0x130   :  { %153 = dma.smem_to_hbm %s273_s0, 16, %s381_s7, [#allocation7]  }
 0x131   :  { %265 = dma.done.wait [#allocation7], 16  }
 0x132   :  { %266 = vsyncadd [#allocation7], 4294967280 }
 0x133   :  { %157 = sfence }
 0x134   :  { %158 = vsyncpa [#allocation6], 1 }
 0x135   :  { %159 = vsyncpa [#allocation10], 1 }
 0x136   :  { %160 = vsyncpa [#allocation7], 1 }
 0x137   :  { %161 = vsyncpa [#allocation8], 1 }
 0x138   :  { %162 = vsyncpa [#allocation13], 1 }

</bundles_post_ra>
